<compile_context>
chip_gen: v5e
topology: v5e:2x2
jax: 0.10.0
libtpu: 0.0.40
codegen_flags: <defaults>
</compile_context>

<pallas_src>
import functools

import jax
import jax.numpy as jnp
from jax.experimental import pallas as pl
from jax.experimental.pallas import tpu as pltpu


def mlp_kernel(x_ref, w1_ref, b1_ref, w2_ref, b2_ref, w3_ref, b3_ref, o_ref):
    # x_ref: [n_in, TILE_B] bf16 (lane-dense: batch on the lane axis)
    # w1: [H, n_in] bf16, w2: [H, H] f32, w3: [n_out, H] f32, biases: [*, 1] f32
    x = x_ref[...]

    h = jnp.dot(w1_ref[...], x, preferred_element_type=jnp.float32) + b1_ref[...]
    h = jnp.tanh(h)
    # (dropout: identity in eval mode)

    h = jnp.dot(w2_ref[...], h, preferred_element_type=jnp.float32) + b2_ref[...]
    h = jnp.tanh(h)
    # (dropout: identity in eval mode)

    y = jnp.dot(w3_ref[...], h, preferred_element_type=jnp.float32) + b3_ref[...]
    o_ref[...] = y.astype(o_ref.dtype)          # bf16 store: halves output HBM bytes


def make_mlp_params(key, n_inputs=1, n_outputs=1, n_hidden=32):
    """Parameter init mirroring nn.Linear(i, o): weight [o, i], bias [o].

    Weights stay in PyTorch-native [out, in] layout (kernel computes
    y_T = W @ x_T). W1 is stored bf16 (dominant HBM stream + MXU-native input
    dtype); W2/W3 and biases are tiny and stay f32.
    """
    n_in = n_inputs * 24
    n_out = n_outputs * 24
    k = jax.random.split(key, 6)

    def linear(kw, kb, fan_in, fan_out):
        bound = 1.0 / jnp.sqrt(fan_in)
        w = jax.random.uniform(kw, (fan_out, fan_in), jnp.float32, -bound, bound)
        b = jax.random.uniform(kb, (fan_out, 1), jnp.float32, -bound, bound)
        return w, b

    w1, b1 = linear(k[0], k[1], n_in, n_hidden)
    w2, b2 = linear(k[2], k[3], n_hidden, n_hidden)
    w3, b3 = linear(k[4], k[5], n_hidden, n_out)
    return (w1.astype(jnp.bfloat16), b1, w2, b2, w3, b3), n_out


def _round_up(v, m):
    return ((v + m - 1) // m) * m


@functools.partial(jax.jit, static_argnums=(2, 3))
def mlp_forward(x, params, n_out, tile_b_max=32768):
    """x: [B, S1, S2] with S1*S2 == n_in. Returns [B, n_out//2, 2] (f32)."""
    w1, b1, w2, b2, w3, b3 = params
    B = x.shape[0]
    n_in = w1.shape[1]
    n_hidden = w1.shape[0]

    # --- Batch tiling: big tiles (amortize ~0.35 us/step), bounded padding. ---
    b_round = _round_up(B, 128)
    num_tiles = pl.cdiv(b_round, tile_b_max)
    tile_b = _round_up(pl.cdiv(b_round, num_tiles), 128)   # multiple of 128 lanes
    b_pad = num_tiles * tile_b                             # waste < ~128 cols/tile

    # --- Layout prep: cast to bf16 BEFORE the transpose (half the transpose
    # bytes); cast + transpose + pad fuse into a single XLA fusion. Padded
    # columns compute tanh(bias) garbage in-kernel and are sliced off below.
    # TODO(synk): ideally the producer emits lane-dense [n_in, B] bf16 directly
    # and the consumer accepts [n_out, B] bf16, removing these transposes.
    x_bf16 = x.reshape(B, n_in).astype(jnp.bfloat16)        # [B, n_in]
    xT = jnp.pad(x_bf16.T, ((0, 0), (0, b_pad - B)))        # [n_in, b_pad]

    resident = lambda shape: pl.BlockSpec(shape, lambda i: (0, 0))

    flops = 2 * b_pad * (n_in * n_hidden + n_hidden * n_hidden + n_hidden * n_out)
    transcendentals = 2 * n_hidden * b_pad
    bytes_accessed = (
        xT.size * xT.dtype.itemsize
        + sum(p.size * p.dtype.itemsize for p in params)
        + n_out * b_pad * 2                                  # bf16 output
    )

    out_t = pl.pallas_call(
        mlp_kernel,
        out_shape=jax.ShapeDtypeStruct((n_out, b_pad), jnp.bfloat16),
        grid=(num_tiles,),
        in_specs=[
            pl.BlockSpec((n_in, tile_b), lambda i: (0, i)),  # x tile (pipelined)
            resident((n_hidden, n_in)),                      # w1 (VMEM-resident)
            resident((n_hidden, 1)),                         # b1
            resident((n_hidden, n_hidden)),                  # w2
            resident((n_hidden, 1)),                         # b2
            resident((n_out, n_hidden)),                     # w3
            resident((n_out, 1)),                            # b3
        ],
        out_specs=pl.BlockSpec((n_out, tile_b), lambda i: (0, i)),
        compiler_params=pltpu.CompilerParams(
            # Batch axis is embarrassingly parallel (megacore / v7x 2 TCs).
            dimension_semantics=("parallel",),
            # 32K-lane tile: ~6 MiB I/O double buffers + ~15-20 MiB f32
            # intermediates. Explicit limit covers v5e's 16 MiB scoped default
            # and stays well under v7x's 64 MiB physical VMEM.
            vmem_limit_bytes=48 * 1024 * 1024,
        ),
        cost_estimate=pl.CostEstimate(
            flops=int(flops),
            transcendentals=int(transcendentals),
            bytes_accessed=int(bytes_accessed),
        ),
    )(xT, w1, b1, w2, b2, w3, b3)

    # Slice padding, transpose back (bf16 -> half the bytes of the old f32
    # transpose), cast to f32 for the module's output contract; fuses in XLA.
    out = out_t[:, :B].T.astype(jnp.float32)                 # [B, n_out]
    return out.reshape(B, n_out // 2, 2)


def mlp_reference(x, params, n_out):
    """Pure-JAX reference mirroring the kernel's dtype handling."""
    w1, b1, w2, b2, w3, b3 = params
    B = x.shape[0]
    h = x.reshape(B, -1).astype(jnp.bfloat16).astype(jnp.float32)
    h = jnp.tanh(h @ w1.astype(jnp.float32).T + b1[:, 0])
    h = jnp.tanh(h @ w2.T + b2[:, 0])
    y = h @ w3.T + b3[:, 0]
    return y.reshape(B, n_out // 2, 2)


if __name__ == "__main__":
    key = jax.random.PRNGKey(0)
    k_param, k_x = jax.random.split(key)

    params, n_out = make_mlp_params(k_param, n_inputs=1, n_outputs=1, n_hidden=32)

    # X: [B, S1, S2] with S1*S2 == 24 (the module flattens dims 1 and 2).
    x = jax.random.normal(k_x, (2, 4, 6), dtype=jnp.float32)

    out = mlp_forward(x, params, n_out)
    out = jax.block_until_ready(out)

    ref = mlp_reference(x, params, n_out)
    assert out.shape == (2, 12, 2), out.shape
    # bf16 kernel output -> ~4e-3 relative rounding vs the f32 reference.
    assert jnp.allclose(out, ref, atol=3e-2, rtol=3e-2), "mismatch vs reference"

    print("KERNEL_OK")
</pallas_src>

<mosaic_0001>
module attributes {stable_mosaic.version = 11 : i64} {
  func.func @mlp_kernel(%arg0: i32, %arg1: memref<24x128xbf16, #tpu.memory_space<vmem>>, %arg2: memref<32x24xbf16, #tpu.memory_space<vmem>>, %arg3: memref<32x1xf32, #tpu.memory_space<vmem>>, %arg4: memref<32x32xf32, #tpu.memory_space<vmem>>, %arg5: memref<32x1xf32, #tpu.memory_space<vmem>>, %arg6: memref<24x32xf32, #tpu.memory_space<vmem>>, %arg7: memref<24x1xf32, #tpu.memory_space<vmem>>, %arg8: memref<24x128xbf16, #tpu.memory_space<vmem>>) attributes {dimension_semantics = [#tpu.dimension_semantics<parallel>], iteration_bounds = array<i64: 1>, scalar_prefetch = 0 : i64, scratch_operands = 0 : i64, tpu.core_type = #tpu.core_type<tc>, window_params = [{transform_indices = @transform_0, window_bounds = array<i64: 24, 128>}, {pipeline_mode = #tpu.pipeline_mode<synchronous>, transform_indices = @transform_1, window_bounds = array<i64: 32, 24>}, {pipeline_mode = #tpu.pipeline_mode<synchronous>, transform_indices = @transform_2, window_bounds = array<i64: 32, 1>}, {pipeline_mode = #tpu.pipeline_mode<synchronous>, transform_indices = @transform_3, window_bounds = array<i64: 32, 32>}, {pipeline_mode = #tpu.pipeline_mode<synchronous>, transform_indices = @transform_4, window_bounds = array<i64: 32, 1>}, {pipeline_mode = #tpu.pipeline_mode<synchronous>, transform_indices = @transform_5, window_bounds = array<i64: 24, 32>}, {pipeline_mode = #tpu.pipeline_mode<synchronous>, transform_indices = @transform_6, window_bounds = array<i64: 24, 1>}, {transform_indices = @transform_7, window_bounds = array<i64: 24, 128>}]} {
    %c0 = arith.constant 0 : index
    %c0_0 = arith.constant 0 : index
    %0 = vector.load %arg1[%c0, %c0_0] : memref<24x128xbf16, #tpu.memory_space<vmem>>, vector<24x128xbf16>
    %c0_1 = arith.constant 0 : index
    %c0_2 = arith.constant 0 : index
    %1 = vector.load %arg2[%c0_1, %c0_2] : memref<32x24xbf16, #tpu.memory_space<vmem>>, vector<32x24xbf16>
    %cst = arith.constant dense<0.000000e+00> : vector<32x128xf32>
    %2 = tpu.matmul %1, %0, %cst {dimension_numbers = #tpu.dot_dimension_numbers<[1], [0], [0], [1], [0, 0, 1, 1], [], []>} : vector<32x24xbf16>, vector<24x128xbf16>, vector<32x128xf32> -> vector<32x128xf32>
    %c0_3 = arith.constant 0 : index
    %c0_4 = arith.constant 0 : index
    %3 = vector.load %arg3[%c0_3, %c0_4] : memref<32x1xf32, #tpu.memory_space<vmem>>, vector<32x1xf32>
    %4 = vector.broadcast %3 : vector<32x1xf32> to vector<32x128xf32>
    %5 = arith.addf %2, %4 : vector<32x128xf32>
    %6 = math.tanh %5 : vector<32x128xf32>
    %c0_5 = arith.constant 0 : index
    %c0_6 = arith.constant 0 : index
    %7 = vector.load %arg4[%c0_5, %c0_6] : memref<32x32xf32, #tpu.memory_space<vmem>>, vector<32x32xf32>
    %cst_7 = arith.constant dense<0.000000e+00> : vector<32x128xf32>
    %8 = tpu.matmul %7, %6, %cst_7 {dimension_numbers = #tpu.dot_dimension_numbers<[1], [0], [0], [1], [0, 0, 1, 1], [], []>} : vector<32x32xf32>, vector<32x128xf32>, vector<32x128xf32> -> vector<32x128xf32>
    %c0_8 = arith.constant 0 : index
    %c0_9 = arith.constant 0 : index
    %9 = vector.load %arg5[%c0_8, %c0_9] : memref<32x1xf32, #tpu.memory_space<vmem>>, vector<32x1xf32>
    %10 = vector.broadcast %9 : vector<32x1xf32> to vector<32x128xf32>
    %11 = arith.addf %8, %10 : vector<32x128xf32>
    %12 = math.tanh %11 : vector<32x128xf32>
    %c0_10 = arith.constant 0 : index
    %c0_11 = arith.constant 0 : index
    %13 = vector.load %arg6[%c0_10, %c0_11] : memref<24x32xf32, #tpu.memory_space<vmem>>, vector<24x32xf32>
    %cst_12 = arith.constant dense<0.000000e+00> : vector<24x128xf32>
    %14 = tpu.matmul %13, %12, %cst_12 {dimension_numbers = #tpu.dot_dimension_numbers<[1], [0], [0], [1], [0, 0, 1, 1], [], []>} : vector<24x32xf32>, vector<32x128xf32>, vector<24x128xf32> -> vector<24x128xf32>
    %c0_13 = arith.constant 0 : index
    %c0_14 = arith.constant 0 : index
    %15 = vector.load %arg7[%c0_13, %c0_14] : memref<24x1xf32, #tpu.memory_space<vmem>>, vector<24x1xf32>
    %16 = vector.broadcast %15 : vector<24x1xf32> to vector<24x128xf32>
    %17 = arith.addf %14, %16 : vector<24x128xf32>
    %18 = arith.truncf %17 : vector<24x128xf32> to vector<24x128xbf16>
    %c0_15 = arith.constant 0 : index
    %c0_16 = arith.constant 0 : index
    %19 = vector.load %arg8[%c0_15, %c0_16] : memref<24x128xbf16, #tpu.memory_space<vmem>>, vector<24x128xbf16>
    tpu.vector_store %arg8[%c0_15, %c0_16], %18 {strides = array<i32>} : memref<24x128xbf16, #tpu.memory_space<vmem>>, vector<24x128xbf16>,
    return
  }
  func.func @transform_0(%arg0: i32) -> (i32, i32) {
    %c0_i32 = arith.constant 0 : i32
    %c0_i32_0 = arith.constant 0 : i32
    return %c0_i32, %arg0 : i32, i32
  }
  func.func @transform_1(%arg0: i32) -> (i32, i32) {
    %c0_i32 = arith.constant 0 : i32
    %c0_i32_0 = arith.constant 0 : i32
    %c0_i32_1 = arith.constant 0 : i32
    return %c0_i32, %c0_i32_0 : i32, i32
  }
  func.func @transform_2(%arg0: i32) -> (i32, i32) {
    %c0_i32 = arith.constant 0 : i32
    %c0_i32_0 = arith.constant 0 : i32
    %c0_i32_1 = arith.constant 0 : i32
    return %c0_i32, %c0_i32_0 : i32, i32
  }
  func.func @transform_3(%arg0: i32) -> (i32, i32) {
    %c0_i32 = arith.constant 0 : i32
    %c0_i32_0 = arith.constant 0 : i32
    %c0_i32_1 = arith.constant 0 : i32
    return %c0_i32, %c0_i32_0 : i32, i32
  }
  func.func @transform_4(%arg0: i32) -> (i32, i32) {
    %c0_i32 = arith.constant 0 : i32
    %c0_i32_0 = arith.constant 0 : i32
    %c0_i32_1 = arith.constant 0 : i32
    return %c0_i32, %c0_i32_0 : i32, i32
  }
  func.func @transform_5(%arg0: i32) -> (i32, i32) {
    %c0_i32 = arith.constant 0 : i32
    %c0_i32_0 = arith.constant 0 : i32
    %c0_i32_1 = arith.constant 0 : i32
    return %c0_i32, %c0_i32_0 : i32, i32
  }
  func.func @transform_6(%arg0: i32) -> (i32, i32) {
    %c0_i32 = arith.constant 0 : i32
    %c0_i32_0 = arith.constant 0 : i32
    %c0_i32_1 = arith.constant 0 : i32
    return %c0_i32, %c0_i32_0 : i32, i32
  }
  func.func @transform_7(%arg0: i32) -> (i32, i32) {
    %c0_i32 = arith.constant 0 : i32
    %c0_i32_0 = arith.constant 0 : i32
    return %c0_i32, %arg0 : i32, i32
  }
}

</mosaic_0001>

<bundles_post_ra>
// kernel: mlp_forward.1
= control target key start
LH: loop header
LB: loop body
LE: loop exit
PB: predicated region body
PF: predicated region fallthrough
CT: control target
= control target key end

     0   :  { %v306_v1 = vmov 0   ;;  %vm84_vm0 = vcmask 1043456   ;;  %vm77_vm1 = vcmask 195584   ;;  %vm139_vm2 = vcmask 261120   ;;  %s426_s0 = inlined_call_operand.vmem [shape: bf16[24,128], index: 0, kind: input, shape index: {}]   ;;  %s427_s2 = inlined_call_operand.vmem [shape: f32[32,1], index: 2, kind: input, shape index: {}]   ;;  %s428_s1 = inlined_call_operand.vmem [shape: bf16[32,24], index: 1, kind: input, shape index: {}]   ;;  %s429_s4 = inlined_call_operand.vmem [shape: f32[32,1], index: 4, kind: input, shape index: {}]   ;;  %s430_s6 = inlined_call_operand.vmem [shape: f32[24,1], index: 6, kind: input, shape index: {}]   ;;  %s431_s3 = inlined_call_operand.vmem [shape: f32[32,32], index: 3, kind: input, shape index: {}]   ;;  %s432_s5 = inlined_call_operand.vmem [shape: f32[24,32], index: 5, kind: input, shape index: {}]   ;;  %s433_s7 = inlined_call_operand.vmem [shape: bf16[24,128], index: 7, kind: output, shape index: {}]  }
   0x1   :  { %v29_v0 = vld [vmem:[%s426_s0 + $0x8] sm:$0xf]  ;;  %287 = vset.pattern.permute.xlu0 %v306_v1  ;;  %v37_v2 = vld [vmem:[%s427_s2 + $0x18] sm:$0xff]  ;;  %288 = vset.pattern.permute.xlu1 %v306_v1  ;;  %v272_v7 = vld [vmem:[%s426_s0] sm:$0xff] }
   0x2   :  { %v73_v3 = vunpack.c.l.b16 %v29_v0  ;;  %55 = vperm.xlu0 %287, %v37_v2   ;;  %v35_v4 = vld [vmem:[%s427_s2 + $0x8] sm:$0xff]  ;;  %289 = vset.pattern.permute.xlu2 %v306_v1  ;;  %v36_v8 = vld [vmem:[%s427_s2 + $0x10] sm:$0xff]  ;;  %v34_v9 = vld [vmem:[%s427_s2] sm:$0xff] }
   0x3   :  { %45 = vperm.xlu1 %288, %v35_v4   ;;  %v274_v10 = vld [vmem:[%s428_s1 + $0x8] sm:$0xff]  ;;  %v273_v11 = vld [vmem:[%s428_s1] sm:$0xff]  ;;  %v190_v15 = vld [vmem:[%s430_s6 + $0x10] sm:$0xff] }
   0x4   :  { %v75_v5 = vpack.c.b16 %v73_v3, %v73_v3  ;;  %v116_v12 = vld [vmem:[%s429_s4 + $0x8] sm:$0xff]  ;;  %v115_v13 = vld [vmem:[%s429_s4] sm:$0xff]  ;;  %v118_v25 = vld [vmem:[%s429_s4 + $0x18] sm:$0xff] }
   0x5   :  { %v189_v14 = vld [vmem:[%s430_s6 + $0x8] sm:$0xff]  ;;  %136 = vperm.xlu2 %289, %v118_v25   ;;  %v117_v29 = vld [vmem:[%s429_s4 + $0x10] sm:$0xff]  ;;  %v111_v33 = vld [vmem:[%s431_s3] sm:$0xff] }
   0x6   :  { %v86_v6 = vsel %vm84_vm0, %v75_v5, 0  ;;  %v112_v34 = vld [vmem:[%s431_s3 + $0x8] sm:$0xff]  ;;  %v188_v36 = vld [vmem:[%s430_s6] sm:$0xff]  ;;  %v113_v37 = vld [vmem:[%s431_s3 + $0x10] sm:$0xff] }
   0x7   :  { %280 = vmatpush.bf16.msra.mxu3 %v86_v6  ;;  %94 = vmatpush.bf16.msra.mxu0 %v86_v6  ;;  %v114_v38 = vld [vmem:[%s431_s3 + $0x18] sm:$0xff]  ;;  %v185_v54 = vld [vmem:[%s432_s5] sm:$0xff]  ;;  %v186_v56 = vld [vmem:[%s432_s5 + $0x8] sm:$0xff] }
   0x8   :  { %v187_v57 = vld [vmem:[%s432_s5 + $0x10] sm:$0xff] }
   0xa   :  { %50 = vperm.xlu0 %287, %v36_v8  }
   0xb   :  { %281 = vmatpush.bf16.msra.mxu3 %v272_v7  ;;  %95 = vmatpush.bf16.msra.mxu0 %v272_v7 }
   0xc   :  { %40 = vperm.xlu1 %288, %v34_v9  }
   0xd   :  { %131 = vperm.xlu2 %289, %v117_v29  }
   0xe   :  { %264 = vmatmul.msk.bf16.vlgmr.msra.gmra.mxu3 %vm77_vm1, %v274_v10  ;;  %263 = vmatmul.msk.bf16.vlgmr.msra.gmra.mxu0 %vm77_vm1, %v273_v11 }
  0x12   :  { %126 = vperm.xlu0 %287, %v116_v12  }
  0x14   :  { %121 = vperm.xlu1 %288, %v115_v13  }
  0x15   :  { %193 = vperm.xlu2 %289, %v188_v36  }
  0x1a   :  { %198 = vperm.xlu0 %287, %v189_v14  }
  0x1c   :  { %203 = vperm.xlu1 %288, %v190_v15  }
  0x5f   :  { %v137_v40 = vpop.permute.xlu2 %136 }
  0x67   :  { %v132_v42 = vpop.permute.xlu2 %131 }
  0x6f   :  { %v194_v60 = vpop.permute.xlu2 %193 }
  0x74   :  { %v56_v16 = vpop.permute.xlu0 %55 }
  0x75   :  { %v46_v19 = vpop.permute.xlu1 %45 }
  0x7c   :  { %v51_v20 = vpop.permute.xlu0 %50 }
  0x7e   :  { %v41_v27 = vpop.permute.xlu1 %40 }
  0x84   :  { %v127_v46 = vpop.permute.xlu0 %126 }
  0x86   :  { %v122_v49 = vpop.permute.xlu1 %121 }
  0x8b   :  { %v97_v17 = vpop.f32.mrf.mxu0 }
  0x8c   :  { %v98_v28 = vadd.f32 %v97_v17, %v41_v27  ;;  %v199_v59 = vpop.permute.xlu0 %198 }
  0x8e   :  { %v204_v1 = vpop.permute.xlu1 %203 }
  0x91   :  { %v102_v18 = vpop.f32.mrf.mxu3 }
  0x92   :  { %v103_v23 = vadd.f32 %v102_v18, %v51_v20 }
  0x93   :  { %v99_v21 = vpop.f32.mrf.mxu0 }
  0x94   :  { %v100_v26 = vadd.f32 %v99_v21, %v46_v19 }
  0x99   :  { %v104_v22 = vpop.f32.mrf.mxu3 }
  0x9a   :  { %v105_v24 = vadd.f32 %v104_v22, %v56_v16 }
  0x9c   :  { %290 = vtanh.f32 %v105_v24 }
  0x9d   :  { %292 = vtanh.f32 %v103_v23 }
  0x9e   :  { %294 = vtanh.f32 %v100_v26 }
  0x9f   :  { %296 = vtanh.f32 %v98_v28 }
  0xa2   :  { %v291_v30 = vpop.eup %290 }
  0xa3   :  { %164 = vmatpush.msrb.mxu0 %v291_v30  ;;  %282 = vmatpush.msra.mxu1 %v291_v30  ;;  %v293_v31 = vpop.eup %292 }
  0xa4   :  { %v295_v32 = vpop.eup %294 }
  0xa5   :  { %165 = vmatpush.msrb.mxu0 %v293_v31  ;;  %283 = vmatpush.msra.mxu1 %v293_v31  ;;  %v297_v35 = vpop.eup %296 }
  0xa7   :  { %166 = vmatpush.msrb.mxu0 %v295_v32  ;;  %284 = vmatpush.msra.mxu1 %v295_v32 }
  0xa9   :  { %167 = vmatpush.msrb.mxu0 %v297_v35  ;;  %285 = vmatpush.msra.mxu1 %v297_v35 }
  0xaa   :  { %265 = vmatmul.msk.f32.vlgmr.msrb.gmra.mxu0 %vm139_vm2, %v111_v33  ;;  %266 = vmatmul.msk.f32.vlgmr.msra.gmra.mxu1 %vm139_vm2, %v112_v34 }
  0xb2   :  { %267 = vmatmul.msk.f32.gmra.mxu1 %vm139_vm2, %v113_v37 }
  0xba   :  { %268 = vmatmul.msk.f32.gmra.mxu1 %vm139_vm2, %v114_v38 }
 0x127   :  { %v172_v39 = vpop.f32.mrf.mxu1  ;;  %v169_v47 = vpop.f32.mrf.mxu0 }
 0x128   :  { %v173_v48 = vadd.f32 %v172_v39, %v127_v46  ;;  %v170_v50 = vadd.f32 %v169_v47, %v122_v49 }
 0x12f   :  { %v175_v41 = vpop.f32.mrf.mxu1 }
 0x130   :  { %v176_v44 = vadd.f32 %v175_v41, %v132_v42 }
 0x137   :  { %v178_v43 = vpop.f32.mrf.mxu1 }
 0x138   :  { %v179_v45 = vadd.f32 %v178_v43, %v137_v40 }
 0x13a   :  { %298 = vtanh.f32 %v179_v45 }
 0x13b   :  { %300 = vtanh.f32 %v176_v44 }
 0x13c   :  { %302 = vtanh.f32 %v173_v48 }
 0x13d   :  { %304 = vtanh.f32 %v170_v50 }
 0x140   :  { %v299_v51 = vpop.eup %298 }
 0x141   :  { %227 = vmatpush.msra.mxu2 %v299_v51  ;;  %v301_v52 = vpop.eup %300 }
 0x142   :  { %v303_v53 = vpop.eup %302 }
 0x143   :  { %228 = vmatpush.msra.mxu2 %v301_v52  ;;  %v305_v55 = vpop.eup %304 }
 0x145   :  { %229 = vmatpush.msra.mxu2 %v303_v53 }
 0x147   :  { %230 = vmatpush.msra.mxu2 %v305_v55 }
 0x148   :  { %269 = vmatmul.msk.f32.vlgmr.msra.gmra.mxu2 %vm139_vm2, %v185_v54 }
 0x150   :  { %270 = vmatmul.msk.f32.gmra.mxu2 %vm139_vm2, %v186_v56 }
 0x158   :  { %271 = vmatmul.msk.f32.gmra.mxu2 %vm139_vm2, %v187_v57 }
 0x1cb   :  { %v232_v58 = vpop.f32.mrf.mxu2 }
 0x1cc   :  { %v233_v62 = vadd.f32 %v232_v58, %v194_v60 }
 0x1d3   :  { %v235_v61 = vpop.f32.mrf.mxu2 }
 0x1d4   :  { %v236_v63 = vadd.f32 %v235_v61, %v199_v59 }
 0x1d6   :  { %v278_v0 = vpack.c.bf16 %v236_v63, %v233_v62 }
 0x1d8   :  { %279 = vst [vmem:[%s433_s7] sm:$0xff] %v278_v0  }
 0x1db   :  { %v238_v2 = vpop.f32.mrf.mxu2 }
 0x1dc   :  { %v239_v3 = vadd.f32 %v238_v2, %v204_v1 }
 0x1de   :  { %v243_v4 = vpack.c.bf16 %v239_v3, %v239_v3 }
 0x1e0   :  { %246 = vst [vmem:[%s433_s7 + $0x8] sm:$0xf] %v243_v4 }

</bundles_post_ra>
